<compile_context>
chip_gen: v7x
topology: tpu7x:2x2x1
jax: 0.10.0
libtpu: 0.0.40
codegen_flags: <defaults>
</compile_context>

<pallas_src>
import jax
import jax.numpy as jnp
from jax import lax
from jax.experimental import pallas as pl
from jax.experimental.pallas import tpu as pltpu

EMBEDDING_DIM = 10
GENRES_DIM = 18          # stand-in for len(CountVectorizer vocabulary)
HIDDEN = 64
EPS = 1e-8               # torch.nn.CosineSimilarity default eps

TB_CAP = 8192            # max batch rows per grid step (≈1.2 MB of inputs, x2 buffers)
MIN_SPLIT = 1024         # below this, 1 grid step beats 2 (fixed ~0.35 µs/step overhead)


def _round_up(x, m):
    return ((x + m - 1) // m) * m


def _pick_tile(batch):
    """Largest tile <= TB_CAP; keep >=2 grid steps on big batches for v7x's 2 TCs."""
    if batch >= MIN_SPLIT:
        return min(TB_CAP, _round_up(pl.cdiv(batch, 2), 8))
    return _round_up(batch, 8)


def _two_tower_kernel(u_ref, m_ref, g_ref, wu_ref, wme_ref, wmg_ref,
                      bu_ref, bm_ref, out_ref):
    # User tower: relu(u @ Wu + bu)
    y_user = jnp.maximum(
        jnp.dot(u_ref[...], wu_ref[...], preferred_element_type=jnp.float32)
        + bu_ref[...], 0.0)                                        # (TB, 64)
    # Movie tower: relu([m | g] @ Wm + bm) computed as two dots against the
    # hoisted weight slices (no concat materialized anywhere).
    x_movie = jnp.maximum(
        jnp.dot(m_ref[...], wme_ref[...], preferred_element_type=jnp.float32)
        + jnp.dot(g_ref[...], wmg_ref[...], preferred_element_type=jnp.float32)
        + bm_ref[...], 0.0)                                        # (TB, 64)

    # cosine similarity: dot * rsqrt(clamp(|x|^2 * |y|^2, eps^2))
    dot = jnp.sum(x_movie * y_user, axis=-1, keepdims=True)
    x2 = jnp.sum(x_movie * x_movie, axis=-1, keepdims=True)
    y2 = jnp.sum(y_user * y_user, axis=-1, keepdims=True)
    out_ref[...] = dot * lax.rsqrt(jnp.maximum(x2 * y2, EPS * EPS))


def prepare_params(params, compute_dtype=jnp.float32):
    """One-time (per param set) prep of kernel-ready weights — NOT in the hot path."""
    E = params["user_embedding"].shape[1]
    wm = params["fc_movie_w"].astype(compute_dtype)
    return {
        "user_embedding": params["user_embedding"],
        "movie_embedding": params["movie_embedding"],
        "wu": params["fc_user_w"].astype(compute_dtype),   # (E, 64)
        "wm_emb": wm[:E],                                   # (E, 64)
        "wm_gen": wm[E:],                                   # (G, 64)
        "bu": params["fc_user_b"].astype(jnp.float32),      # (1, 64)
        "bm": params["fc_movie_b"].astype(jnp.float32),     # (1, 64)
    }


def two_tower_forward(user_id, movie_id, genres, prepared):
    """user_id, movie_id: int32 (B,); genres: float32 (B, G); prepared = prepare_params(...)."""
    # Embedding gathers stay in XLA for this demo.
    # TODO(synk): in-kernel row gather (scalar prefetch + DMA) at production scale.
    user_emb = prepared["user_embedding"][user_id]      # (B, E)
    movie_emb = prepared["movie_embedding"][movie_id]   # (B, E)

    cdt = prepared["wu"].dtype
    user_emb = user_emb.astype(cdt)
    movie_emb = movie_emb.astype(cdt)
    genres = genres.astype(cdt)

    B, E = user_emb.shape
    G = genres.shape[1]
    tb = _pick_tile(B)
    num_tiles = pl.cdiv(B, tb)     # ragged tail block: garbage rows sliced off below

    cost = pl.CostEstimate(
        flops=2 * B * HIDDEN * (2 * E + G) + 10 * B * HIDDEN,
        transcendentals=B,
        bytes_accessed=4 * (B * (2 * E + G) + HIDDEN * (2 * E + G) + 2 * HIDDEN + B),
    )

    out = pl.pallas_call(
        _two_tower_kernel,
        out_shape=jax.ShapeDtypeStruct((B, 1), jnp.float32),
        grid=(num_tiles,),
        in_specs=[
            pl.BlockSpec((tb, E), lambda i: (i, 0)),        # user_embedded tile
            pl.BlockSpec((tb, E), lambda i: (i, 0)),        # movie_embedded tile
            pl.BlockSpec((tb, G), lambda i: (i, 0)),        # genres tile
            pl.BlockSpec((E, HIDDEN), lambda i: (0, 0)),    # Wu       (resident)
            pl.BlockSpec((E, HIDDEN), lambda i: (0, 0)),    # Wm[:E]   (resident)
            pl.BlockSpec((G, HIDDEN), lambda i: (0, 0)),    # Wm[E:]   (resident)
            pl.BlockSpec((1, HIDDEN), lambda i: (0, 0)),    # bu       (resident)
            pl.BlockSpec((1, HIDDEN), lambda i: (0, 0)),    # bm       (resident)
        ],
        out_specs=pl.BlockSpec((tb, 1), lambda i: (i, 0)),
        compiler_params=pltpu.CompilerParams(
            dimension_semantics=("parallel",)),
        cost_estimate=cost,
    )(user_emb, movie_emb, genres,
      prepared["wu"], prepared["wm_emb"], prepared["wm_gen"],
      prepared["bu"], prepared["bm"])

    return out[:, 0]   # (B,) — matches torch CosineSimilarity(dim=1) output


def init_params(key, num_users, num_movies, embedding_dim, genres_dim, hidden):
    ks = jax.random.split(key, 6)
    # nn.Embedding default init: N(0, 1)
    user_embedding = jax.random.normal(ks[0], (num_users, embedding_dim), jnp.float32)
    movie_embedding = jax.random.normal(ks[1], (num_movies, embedding_dim), jnp.float32)
    # nn.Linear default init: U(-1/sqrt(fan_in), 1/sqrt(fan_in))
    bu_bound = 1.0 / jnp.sqrt(embedding_dim)
    bm_bound = 1.0 / jnp.sqrt(embedding_dim + genres_dim)
    fc_user_w = jax.random.uniform(ks[2], (embedding_dim, hidden), jnp.float32,
                                   -bu_bound, bu_bound)
    fc_user_b = jax.random.uniform(ks[3], (1, hidden), jnp.float32,
                                   -bu_bound, bu_bound)
    fc_movie_w = jax.random.uniform(ks[4], (embedding_dim + genres_dim, hidden),
                                    jnp.float32, -bm_bound, bm_bound)
    fc_movie_b = jax.random.uniform(ks[5], (1, hidden), jnp.float32,
                                    -bm_bound, bm_bound)
    return {
        "user_embedding": user_embedding,
        "movie_embedding": movie_embedding,
        "fc_user_w": fc_user_w,
        "fc_user_b": fc_user_b,
        "fc_movie_w": fc_movie_w,
        "fc_movie_b": fc_movie_b,
    }


def _reference(user_id, movie_id, genres, params):
    u = params["user_embedding"][user_id]
    m = params["movie_embedding"][movie_id]
    mf = jnp.concatenate([m, genres], axis=1)
    x = jnp.maximum(
        jnp.dot(mf, params["fc_movie_w"], precision=lax.Precision.HIGHEST)
        + params["fc_movie_b"], 0.0)
    y = jnp.maximum(
        jnp.dot(u, params["fc_user_w"], precision=lax.Precision.HIGHEST)
        + params["fc_user_b"], 0.0)
    dot = jnp.sum(x * y, axis=-1)
    x2 = jnp.sum(x * x, axis=-1)
    y2 = jnp.sum(y * y, axis=-1)
    return dot / jnp.sqrt(jnp.maximum(x2 * y2, EPS * EPS))


if __name__ == "__main__":
    num_users, num_movies = 32, 48
    batch = 8

    key = jax.random.PRNGKey(0)
    k_params, k_uid, k_mid, k_gen = jax.random.split(key, 4)

    params = init_params(k_params, num_users, num_movies,
                         EMBEDDING_DIM, GENRES_DIM, HIDDEN)
    # Weight prep hoisted out of the per-call forward path (done once).
    prepared = prepare_params(params, compute_dtype=jnp.float32)

    user_id = jax.random.randint(k_uid, (batch,), 0, num_users, jnp.int32)
    movie_id = jax.random.randint(k_mid, (batch,), 0, num_movies, jnp.int32)
    # multi-hot genres (CountVectorizer-style counts), float32
    genres = jax.random.bernoulli(k_gen, 0.3, (batch, GENRES_DIM)).astype(jnp.float32)

    fwd = jax.jit(two_tower_forward)
    sim = fwd(user_id, movie_id, genres, prepared)
    sim = jax.block_until_ready(sim)

    ref = _reference(user_id, movie_id, genres, params)
    assert sim.shape == (batch,)
    assert jnp.allclose(sim, ref, atol=5e-5, rtol=5e-5)
    print("KERNEL_OK")
</pallas_src>

<mosaic_0001>
module attributes {stable_mosaic.version = 11 : i64} {
  func.func @_two_tower_kernel(%arg0: i32, %arg1: memref<8x10xf32, #tpu.memory_space<vmem>>, %arg2: memref<8x10xf32, #tpu.memory_space<vmem>>, %arg3: memref<8x18xf32, #tpu.memory_space<vmem>>, %arg4: memref<10x64xf32, #tpu.memory_space<vmem>>, %arg5: memref<10x64xf32, #tpu.memory_space<vmem>>, %arg6: memref<18x64xf32, #tpu.memory_space<vmem>>, %arg7: memref<1x64xf32, #tpu.memory_space<vmem>>, %arg8: memref<1x64xf32, #tpu.memory_space<vmem>>, %arg9: memref<8x1xf32, #tpu.memory_space<vmem>>) attributes {dimension_semantics = [#tpu.dimension_semantics<parallel>], iteration_bounds = array<i64: 1>, scalar_prefetch = 0 : i64, scratch_operands = 0 : i64, tpu.core_type = #tpu.core_type<tc>, window_params = [{transform_indices = @transform_0, window_bounds = array<i64: 8, 10>}, {transform_indices = @transform_1, window_bounds = array<i64: 8, 10>}, {transform_indices = @transform_2, window_bounds = array<i64: 8, 18>}, {pipeline_mode = #tpu.pipeline_mode<synchronous>, transform_indices = @transform_3, window_bounds = array<i64: 10, 64>}, {pipeline_mode = #tpu.pipeline_mode<synchronous>, transform_indices = @transform_4, window_bounds = array<i64: 10, 64>}, {pipeline_mode = #tpu.pipeline_mode<synchronous>, transform_indices = @transform_5, window_bounds = array<i64: 18, 64>}, {pipeline_mode = #tpu.pipeline_mode<synchronous>, transform_indices = @transform_6, window_bounds = array<i64: 1, 64>}, {pipeline_mode = #tpu.pipeline_mode<synchronous>, transform_indices = @transform_7, window_bounds = array<i64: 1, 64>}, {transform_indices = @transform_8, window_bounds = array<i64: 8, 1>}]} {
    %c0 = arith.constant 0 : index
    %c0_0 = arith.constant 0 : index
    %0 = vector.load %arg1[%c0, %c0_0] : memref<8x10xf32, #tpu.memory_space<vmem>>, vector<8x10xf32>
    %c0_1 = arith.constant 0 : index
    %c0_2 = arith.constant 0 : index
    %1 = vector.load %arg4[%c0_1, %c0_2] : memref<10x64xf32, #tpu.memory_space<vmem>>, vector<10x64xf32>
    %cst = arith.constant dense<0.000000e+00> : vector<8x64xf32>
    %2 = tpu.matmul %0, %1, %cst {dimension_numbers = #tpu.dot_dimension_numbers<[1], [0], [0], [1], [0, 0, 1, 1], [], []>} : vector<8x10xf32>, vector<10x64xf32>, vector<8x64xf32> -> vector<8x64xf32>
    %c0_3 = arith.constant 0 : index
    %c0_4 = arith.constant 0 : index
    %3 = vector.load %arg7[%c0_3, %c0_4] : memref<1x64xf32, #tpu.memory_space<vmem>>, vector<1x64xf32>
    %4 = vector.broadcast %3 : vector<1x64xf32> to vector<8x64xf32>
    %5 = arith.addf %2, %4 : vector<8x64xf32>
    %cst_5 = arith.constant 0.000000e+00 : f32
    %6 = vector.broadcast %cst_5 : f32 to vector<8x64xf32>
    %7 = arith.maximumf %5, %6 : vector<8x64xf32>
    %c0_6 = arith.constant 0 : index
    %c0_7 = arith.constant 0 : index
    %8 = vector.load %arg2[%c0_6, %c0_7] : memref<8x10xf32, #tpu.memory_space<vmem>>, vector<8x10xf32>
    %c0_8 = arith.constant 0 : index
    %c0_9 = arith.constant 0 : index
    %9 = vector.load %arg5[%c0_8, %c0_9] : memref<10x64xf32, #tpu.memory_space<vmem>>, vector<10x64xf32>
    %cst_10 = arith.constant dense<0.000000e+00> : vector<8x64xf32>
    %10 = tpu.matmul %8, %9, %cst_10 {dimension_numbers = #tpu.dot_dimension_numbers<[1], [0], [0], [1], [0, 0, 1, 1], [], []>} : vector<8x10xf32>, vector<10x64xf32>, vector<8x64xf32> -> vector<8x64xf32>
    %c0_11 = arith.constant 0 : index
    %c0_12 = arith.constant 0 : index
    %11 = vector.load %arg3[%c0_11, %c0_12] : memref<8x18xf32, #tpu.memory_space<vmem>>, vector<8x18xf32>
    %c0_13 = arith.constant 0 : index
    %c0_14 = arith.constant 0 : index
    %12 = vector.load %arg6[%c0_13, %c0_14] : memref<18x64xf32, #tpu.memory_space<vmem>>, vector<18x64xf32>
    %cst_15 = arith.constant dense<0.000000e+00> : vector<8x64xf32>
    %13 = tpu.matmul %11, %12, %cst_15 {dimension_numbers = #tpu.dot_dimension_numbers<[1], [0], [0], [1], [0, 0, 1, 1], [], []>} : vector<8x18xf32>, vector<18x64xf32>, vector<8x64xf32> -> vector<8x64xf32>
    %14 = arith.addf %10, %13 : vector<8x64xf32>
    %c0_16 = arith.constant 0 : index
    %c0_17 = arith.constant 0 : index
    %15 = vector.load %arg8[%c0_16, %c0_17] : memref<1x64xf32, #tpu.memory_space<vmem>>, vector<1x64xf32>
    %16 = vector.broadcast %15 : vector<1x64xf32> to vector<8x64xf32>
    %17 = arith.addf %14, %16 : vector<8x64xf32>
    %cst_18 = arith.constant 0.000000e+00 : f32
    %18 = vector.broadcast %cst_18 : f32 to vector<8x64xf32>
    %19 = arith.maximumf %17, %18 : vector<8x64xf32>
    %20 = arith.mulf %19, %7 : vector<8x64xf32>
    %cst_19 = arith.constant dense<0.000000e+00> : vector<8xf32>
    %21 = vector.multi_reduction <add>, %20, %cst_19 [1] : vector<8x64xf32> to vector<8xf32>
    %22 = vector.shape_cast %21 : vector<8xf32> to vector<8x1xf32>
    %23 = arith.mulf %19, %19 : vector<8x64xf32>
    %cst_20 = arith.constant dense<0.000000e+00> : vector<8xf32>
    %24 = vector.multi_reduction <add>, %23, %cst_20 [1] : vector<8x64xf32> to vector<8xf32>
    %25 = vector.shape_cast %24 : vector<8xf32> to vector<8x1xf32>
    %26 = arith.mulf %7, %7 : vector<8x64xf32>
    %cst_21 = arith.constant dense<0.000000e+00> : vector<8xf32>
    %27 = vector.multi_reduction <add>, %26, %cst_21 [1] : vector<8x64xf32> to vector<8xf32>
    %28 = vector.shape_cast %27 : vector<8xf32> to vector<8x1xf32>
    %29 = arith.mulf %25, %28 : vector<8x1xf32>
    %cst_22 = arith.constant 1.000000e-16 : f32
    %30 = vector.broadcast %cst_22 : f32 to vector<8x1xf32>
    %31 = arith.maximumf %29, %30 : vector<8x1xf32>
    %32 = math.rsqrt %31 : vector<8x1xf32>
    %33 = arith.mulf %22, %32 : vector<8x1xf32>
    %c0_23 = arith.constant 0 : index
    %c0_24 = arith.constant 0 : index
    %34 = vector.load %arg9[%c0_23, %c0_24] : memref<8x1xf32, #tpu.memory_space<vmem>>, vector<8x1xf32>
    tpu.vector_store %arg9[%c0_23, %c0_24], %33 {strides = array<i32>} : memref<8x1xf32, #tpu.memory_space<vmem>>, vector<8x1xf32>,
    return
  }
  func.func @transform_0(%arg0: i32) -> (i32, i32) {
    %c0_i32 = arith.constant 0 : i32
    %c0_i32_0 = arith.constant 0 : i32
    return %arg0, %c0_i32 : i32, i32
  }
  func.func @transform_1(%arg0: i32) -> (i32, i32) {
    %c0_i32 = arith.constant 0 : i32
    %c0_i32_0 = arith.constant 0 : i32
    return %arg0, %c0_i32 : i32, i32
  }
  func.func @transform_2(%arg0: i32) -> (i32, i32) {
    %c0_i32 = arith.constant 0 : i32
    %c0_i32_0 = arith.constant 0 : i32
    return %arg0, %c0_i32 : i32, i32
  }
  func.func @transform_3(%arg0: i32) -> (i32, i32) {
    %c0_i32 = arith.constant 0 : i32
    %c0_i32_0 = arith.constant 0 : i32
    %c0_i32_1 = arith.constant 0 : i32
    return %c0_i32, %c0_i32_0 : i32, i32
  }
  func.func @transform_4(%arg0: i32) -> (i32, i32) {
    %c0_i32 = arith.constant 0 : i32
    %c0_i32_0 = arith.constant 0 : i32
    %c0_i32_1 = arith.constant 0 : i32
    return %c0_i32, %c0_i32_0 : i32, i32
  }
  func.func @transform_5(%arg0: i32) -> (i32, i32) {
    %c0_i32 = arith.constant 0 : i32
    %c0_i32_0 = arith.constant 0 : i32
    %c0_i32_1 = arith.constant 0 : i32
    return %c0_i32, %c0_i32_0 : i32, i32
  }
  func.func @transform_6(%arg0: i32) -> (i32, i32) {
    %c0_i32 = arith.constant 0 : i32
    %c0_i32_0 = arith.constant 0 : i32
    %c0_i32_1 = arith.constant 0 : i32
    return %c0_i32, %c0_i32_0 : i32, i32
  }
  func.func @transform_7(%arg0: i32) -> (i32, i32) {
    %c0_i32 = arith.constant 0 : i32
    %c0_i32_0 = arith.constant 0 : i32
    %c0_i32_1 = arith.constant 0 : i32
    return %c0_i32, %c0_i32_0 : i32, i32
  }
  func.func @transform_8(%arg0: i32) -> (i32, i32) {
    %c0_i32 = arith.constant 0 : i32
    %c0_i32_0 = arith.constant 0 : i32
    return %arg0, %c0_i32 : i32, i32
  }
}

</mosaic_0001>

<bundles_post_ra>
// kernel: two_tower_forward.1
= control target key start
LH: loop header
LB: loop body
LE: loop exit
PB: predicated region body
PF: predicated region fallthrough
CT: control target
= control target key end

     0   :  { %vm43_vm0 = vcmask 1041408   ;;  %v368_v0 = vmov 0.0|0.0   ;;  %vm369_vm1 = vmmov 1   ;;  %vm370_vm3 = vmmov 0   ;;  %s471_s3 = inlined_call_operand.vmem [shape: f32[10,64], index: 3, kind: input, shape index: {}]   ;;  %s472_s5 = inlined_call_operand.vmem [shape: f32[18,64], index: 5, kind: input, shape index: {}]   ;;  %s473_s4 = inlined_call_operand.vmem [shape: f32[10,64], index: 4, kind: input, shape index: {}]   ;;  %s474_s0 = inlined_call_operand.vmem [shape: f32[8,10], index: 0, kind: input, shape index: {}]   ;;  %s475_s2 = inlined_call_operand.vmem [shape: f32[8,18], index: 2, kind: input, shape index: {}]   ;;  %s476_s1 = inlined_call_operand.vmem [shape: f32[8,10], index: 1, kind: input, shape index: {}]   ;;  %s477_s6 = inlined_call_operand.vmem [shape: f32[1,64], index: 6, kind: input, shape index: {}]   ;;  %s478_s7 = inlined_call_operand.vmem [shape: f32[1,64], index: 7, kind: input, shape index: {}]   ;;  %s479_s8 = inlined_call_operand.vmem [shape: f32[8,1], index: 8, kind: output, shape index: {}]  }
   0x1   :  { %351 = vmatprep.subr.bf16.mxu0 %v368_v0  ;;  %v30_v1 = vld [vmem:[%s471_s3] sm:$0xff]  ;;  %v31_v2 = vld [vmem:[%s471_s3 + $0x8] sm:$0x3]  ;;  %vm424_vm2 = vmpackc.low %vm43_vm0, %vm369_vm1  ;;  %355 = vmatprep.subr.bf16.mxu1 %v368_v0  ;;  %v371_v5 = vmov 0.0   ;;  %vm39_vm4 = vcmask 80896   ;;  %vm125_vm5 = vcmask 146432  }
   0x2   :  { %v352_v4 = vpack.c.bf16 %v31_v2, %v30_v1  ;;  %332 = vmatprep.mubr.msk.f32.mxu0 %vm370_vm3, %v371_v5  ;;  %v122_v6 = vld [vmem:[%s472_s5] sm:$0xff]  ;;  %v123_v7 = vld [vmem:[%s472_s5 + $0x8] sm:$0xff]  ;;  %341 = vmatprep.mubr.msk.f32.mxu1 %vm370_vm3, %v371_v5  ;;  %v124_v13 = vld [vmem:[%s472_s5 + $0x10] sm:$0x3]  ;;  %vm288_vm6 = vcmask 523264   ;;  %vm304_vm7 = vcmask 7168  }
   0x3   :  { %v356_v8 = vpack.c.bf16 %v123_v7, %v122_v6  ;;  %v119_v9 = vld [vmem:[%s473_s4] sm:$0xff]  ;;  %v120_v10 = vld [vmem:[%s473_s4 + $0x8] sm:$0x3] }
   0x4   :  { %354 = vmatpush3.bf16.msk.msra.mxu0 %vm424_vm2, %v352_v4  ;;  %v29_v11 = vld [vmem:[%s474_s0] sm:$0xff]  ;;  %v359_v12 = vpack.c.bf16 %v120_v10, %v119_v9 }
   0x5   :  { %357 = vmatpush3.bf16.msra.mxu1 %v356_v8  ;;  %358 = vmatprep.subr.bf16.mxu0 %v368_v0  ;;  %v121_v14 = vld [vmem:[%s475_s2] sm:$0xff] }
   0x6   :  { %339 = vmatprep.subr.mxu1 %v371_v5  ;;  %v118_v15 = vld [vmem:[%s476_s1] sm:$0xff] }
   0x7   :  { %333 = vmatmul.mubr.msk.f32.vlgmr.msra.gmra.mrb[0].mxu0 %vm39_vm4, %v29_v11  ;;  %v310_v18 = vld [vmem:[%s477_s6] ss:$0 sm:$0xff] }
   0x8   :  { %361 = vmatpush3.bf16.msk.msra.mxu0 %vm424_vm2, %v359_v12  ;;  %348 = vmatprep.mubr.msk.f32.mxu0 %vm370_vm3, %v371_v5  ;;  %v317_v21 = vld [vmem:[%s478_s7] ss:$0 sm:$0xff] }
   0x9   :  { %340 = vmatpush3.msk.msra.mxu1 %vm43_vm0, %v124_v13 }
   0xa   :  { %342 = vmatmul.mubr.msk.f32.vlgmr.msra.gmra.mrb[0].mxu1 %vm125_vm5, %v121_v14 }
   0xb   :  { %349 = vmatmul.mubr.msk.f32.vlgmr.msra.gmra.mrb[2].mxu0 %vm39_vm4, %v118_v15 }
  0xda   :  { %v113_v16 = vpop.f32.mrb[0].mxu0 }
  0xdb   :  { %v334_v17 = vpop.f32.mrb[1].mxu0  ;;  %v114_v23 = vadd.f32 %v310_v18, %v113_v16 }
  0xdd   :  { %v198_v19 = vpop.f32.mrb[0].mxu1  ;;  %v117_v27 = vmax.f32 %v114_v23, 0.0 }
  0xde   :  { %v274_v20 = vpop.f32.mrb[2].mxu0  ;;  %v343_v22 = vpop.f32.mrb[1].mxu1 }
  0xdf   :  { %v275_v24 = vadd.f32 %v274_v20, %v198_v19  ;;  %v350_v25 = vpop.f32.mrb[3].mxu0  ;;  %v296_v33 = vmul.f32 %v117_v27, %v117_v27 }
  0xe1   :  { %v285_v26 = vadd.f32 %v317_v21, %v275_v24  ;;  %v297_v34 = vsel %vm288_vm6, %v296_v33, 0.0 }
  0xe3   :  { %v286_v28 = vmax.f32 %v285_v26, 0.0 }
  0xe5   :  { %v292_v29 = vmul.f32 %v286_v28, %v286_v28  ;;  %v287_v30 = vmul.f32 %v286_v28, %v117_v27 }
  0xe7   :  { %v293_v31 = vsel %vm288_vm6, %v292_v29, 0.0  ;;  %v289_v32 = vsel %vm288_vm6, %v287_v30, 0.0 }
  0xe8   :  { %294 = vadd.xlane.f32.xlu0 %v293_v31  ;;  %290 = vadd.xlane.f32.xlu1 %v289_v32 }
  0xec   :  { %298 = vadd.xlane.f32.xlu0 %v297_v34 }
 0x175   :  { %v295_v35 = vpop.xlane.xlu0 %294  ;;  %v291_v40 = vpop.xlane.xlu1 %290 }
 0x179   :  { %v299_v36 = vpop.xlane.xlu0 %298 }
 0x17a   :  { %v300_v37 = vmul.f32 %v299_v36, %v295_v35 }
 0x17c   :  { %v301_v38 = vmax.f32 %v300_v37, 1e-16 }
 0x17e   :  { %366 = vrsqrt.f32 %v301_v38 }
 0x188   :  { %v367_v39 = vpop.eup %366 }
 0x189   :  { %v303_v41 = vmul.f32 %v367_v39, %v291_v40 }
 0x18b   :  { %305 = vst.msk [vmem:[%s479_s8] sm:$0xff] %vm304_vm7, %v303_v41 }

</bundles_post_ra>
